<compile_context>
chip_gen: v7x
topology: tpu7x:2x2x1
jax: 0.10.0
libtpu: 0.0.40
codegen_flags: <defaults>
</compile_context>

<pallas_src>
import functools

import jax
import jax.numpy as jnp
from jax.experimental import pallas as pl
from jax.experimental.pallas import tpu as pltpu

_LANES = 128
_SUBLANES = 8
_MAX_TILE_ROWS = 1024  # 1024 x 128 x 4B = 512 KiB per input block


def _relative_loss_tile_kernel(pred_ref, target_ref, out_ref, *,
                               epsilon, n_valid, tile_r):
    """One row-tile of the relative-error partial sums.

    pred_ref / target_ref : (tile_r, 128) block of the (rows, 128) input slab.
    out_ref               : (8, 128) f32 partial sums for this tile.
    """
    i = pl.program_id(0)

    p = pred_ref[...].astype(jnp.float32)
    t = target_ref[...].astype(jnp.float32)

    # Exact form (keeps the rtol=1e-5 check tight); HBM-bound anyway.
    rel = jnp.abs(p - t) / (jnp.abs(t) + epsilon)

    # Mask host padding AND any garbage rows of a partial final block.
    # Must be a select (jnp.where), not a multiply: garbage * 0 could be NaN.
    row_ids = jax.lax.broadcasted_iota(jnp.int32, (tile_r, _LANES), 0)
    col_ids = jax.lax.broadcasted_iota(jnp.int32, (tile_r, _LANES), 1)
    gidx = (i * tile_r + row_ids) * _LANES + col_ids
    rel = jnp.where(gidx < n_valid, rel, 0.0)

    # Fold (tile_r, 128) -> (8, 128) with pure VPU adds over sublane-aligned
    # one-vreg slices.  Cross-lane reduction + 1/N are deferred to the wrapper
    # so every grid step stays independent (parallel axis / megacore on v7x).
    part = rel[0:_SUBLANES, :]
    for g in range(1, tile_r // _SUBLANES):
        part = part + rel[g * _SUBLANES:(g + 1) * _SUBLANES, :]
    out_ref[...] = part


def relative_loss(pred, target, epsilon=1e-6):
    """Pallas implementation of RelativeLoss.forward.

    pred:   [batch] float
    target: [batch] float
    returns scalar f32 = mean(|pred - target| / (|target| + epsilon))
    """
    assert pred.shape == target.shape and pred.ndim == 1
    n = pred.shape[0]

    # Round the element count up to whole (8, 128) vreg tiles so the 1-D input
    # can be viewed as a 2-D lane-dense slab.  Only the final sub-tile
    # remainder is padded; if n is already a multiple of 1024 no copy happens.
    slab = _SUBLANES * _LANES  # 1024
    padded = ((n + slab - 1) // slab) * slab
    if padded != n:
        pred = jnp.pad(pred, (0, padded - n))
        target = jnp.pad(target, (0, padded - n))

    rows = padded // _LANES           # multiple of 8
    pred2d = pred.reshape(rows, _LANES)      # free bitcast reshape
    target2d = target.reshape(rows, _LANES)

    # Row tile: >=512 rows reaches ~85% of HBM roofline; 1024 keeps
    # 2 inputs x 2 buffers = 2 MiB of VMEM (safe on v7x's 32 MiB scoped limit).
    tile_r = min(_MAX_TILE_ROWS, rows)       # always a multiple of 8
    num_tiles = pl.cdiv(rows, tile_r)

    partials = pl.pallas_call(
        functools.partial(_relative_loss_tile_kernel,
                          epsilon=float(epsilon), n_valid=n, tile_r=tile_r),
        out_shape=jax.ShapeDtypeStruct((num_tiles * _SUBLANES, _LANES),
                                       jnp.float32),
        grid=(num_tiles,),
        in_specs=[
            pl.BlockSpec((tile_r, _LANES), lambda i: (i, 0)),
            pl.BlockSpec((tile_r, _LANES), lambda i: (i, 0)),
        ],
        out_specs=pl.BlockSpec((_SUBLANES, _LANES), lambda i: (i, 0)),
        compiler_params=pltpu.CompilerParams(
            dimension_semantics=("parallel",)),
    )(pred2d, target2d)

    # Single cross-lane reduction + mean normalization at the very end
    # (better f32 accuracy than pre-scaling every element by 1/n).
    return jnp.sum(partials) / n


if __name__ == "__main__":
    key = jax.random.PRNGKey(0)
    k1, k2 = jax.random.split(key)

    # Small shape matching the module's [batch] inputs.
    batch = 16
    pred = jax.random.normal(k1, (batch,), dtype=jnp.float32)
    target = jax.random.normal(k2, (batch,), dtype=jnp.float32)

    loss = relative_loss(pred, target)
    jax.block_until_ready(loss)

    ref = jnp.mean(jnp.abs(pred - target) / (jnp.abs(target) + 1e-6))
    assert jnp.allclose(loss, ref, rtol=1e-5, atol=1e-6), (loss, ref)

    # Also exercise the multi-tile grid + partial-last-block masking path
    # (batch not a multiple of 128, spans 2 row tiles).  Still tiny (~1 MB).
    k3, k4 = jax.random.split(k2)
    batch2 = 250_000
    pred2 = jax.random.normal(k3, (batch2,), dtype=jnp.float32)
    target2 = jax.random.normal(k4, (batch2,), dtype=jnp.float32)
    loss2 = relative_loss(pred2, target2)
    jax.block_until_ready(loss2)
    ref2 = jnp.mean(jnp.abs(pred2 - target2) / (jnp.abs(target2) + 1e-6))
    assert jnp.allclose(loss2, ref2, rtol=1e-4, atol=1e-6), (loss2, ref2)

    print("KERNEL_OK")
</pallas_src>

<mosaic_0001>
module attributes {stable_mosaic.version = 11 : i64} {
  func.func @_relative_loss_tile_kernel(%arg0: i32, %arg1: memref<8x128xf32, #tpu.memory_space<vmem>>, %arg2: memref<8x128xf32, #tpu.memory_space<vmem>>, %arg3: memref<8x128xf32, #tpu.memory_space<vmem>>) attributes {dimension_semantics = [#tpu.dimension_semantics<parallel>], iteration_bounds = array<i64: 1>, scalar_prefetch = 0 : i64, scratch_operands = 0 : i64, tpu.core_type = #tpu.core_type<tc>, window_params = [{transform_indices = @transform_0, window_bounds = array<i64: 8, 128>}, {transform_indices = @transform_1, window_bounds = array<i64: 8, 128>}, {transform_indices = @transform_2, window_bounds = array<i64: 8, 128>}]} {
    %c0 = arith.constant 0 : index
    %c0_0 = arith.constant 0 : index
    %0 = vector.load %arg1[%c0, %c0_0] : memref<8x128xf32, #tpu.memory_space<vmem>>, vector<8x128xf32>
    %c0_1 = arith.constant 0 : index
    %c0_2 = arith.constant 0 : index
    %1 = vector.load %arg2[%c0_1, %c0_2] : memref<8x128xf32, #tpu.memory_space<vmem>>, vector<8x128xf32>
    %2 = arith.subf %0, %1 : vector<8x128xf32>
    %3 = math.absf %2 : vector<8x128xf32>
    %4 = math.absf %1 : vector<8x128xf32>
    %cst = arith.constant 9.99999997E-7 : f32
    %5 = vector.broadcast %cst : f32 to vector<8x128xf32>
    %6 = arith.addf %4, %5 : vector<8x128xf32>
    %7 = arith.divf %3, %6 : vector<8x128xf32>
    %8 = tpu.iota {dimensions = array<i32: 0>} : vector<8x128xi32>
    %9 = tpu.iota {dimensions = array<i32: 1>} : vector<8x128xi32>
    %c8_i32 = arith.constant 8 : i32
    %10 = arith.muli %arg0, %c8_i32 : i32
    %11 = vector.broadcast %10 : i32 to vector<8x128xi32>
    %12 = arith.addi %11, %8 : vector<8x128xi32>
    %c128_i32 = arith.constant 128 : i32
    %13 = vector.broadcast %c128_i32 : i32 to vector<8x128xi32>
    %14 = arith.muli %12, %13 : vector<8x128xi32>
    %15 = arith.addi %14, %9 : vector<8x128xi32>
    %c16_i32 = arith.constant 16 : i32
    %16 = vector.broadcast %c16_i32 : i32 to vector<8x128xi32>
    %17 = arith.cmpi slt, %15, %16 : vector<8x128xi32>
    %cst_3 = arith.constant 0.000000e+00 : f32
    %18 = vector.broadcast %cst_3 : f32 to vector<8x128xf32>
    %19 = arith.select %17, %7, %18 : vector<8x128xi1>, vector<8x128xf32>
    %c0_4 = arith.constant 0 : index
    %c0_5 = arith.constant 0 : index
    %20 = vector.load %arg3[%c0_4, %c0_5] : memref<8x128xf32, #tpu.memory_space<vmem>>, vector<8x128xf32>
    tpu.vector_store %arg3[%c0_4, %c0_5], %19 {strides = array<i32>} : memref<8x128xf32, #tpu.memory_space<vmem>>, vector<8x128xf32>,
    return
  }
  func.func @transform_0(%arg0: i32) -> (i32, i32) {
    %c0_i32 = arith.constant 0 : i32
    %c0_i32_0 = arith.constant 0 : i32
    return %arg0, %c0_i32 : i32, i32
  }
  func.func @transform_1(%arg0: i32) -> (i32, i32) {
    %c0_i32 = arith.constant 0 : i32
    %c0_i32_0 = arith.constant 0 : i32
    return %arg0, %c0_i32 : i32, i32
  }
  func.func @transform_2(%arg0: i32) -> (i32, i32) {
    %c0_i32 = arith.constant 0 : i32
    %c0_i32_0 = arith.constant 0 : i32
    return %arg0, %c0_i32 : i32, i32
  }
}

</mosaic_0001>

<bundles_post_ra>
// kernel: tpu_custom_call.1
= control target key start
LH: loop header
LB: loop body
LE: loop exit
PB: predicated region body
PF: predicated region fallthrough
CT: control target
= control target key end

     0   :  { %7 = vsyncpa [#allocation3], 0  ;;  %s203_s0 = inlined_call_operand.hbm [shape: f32[8,128], index: 0, kind: input, shape index: {}]   ;;  %s204_s1 = inlined_call_operand.hbm [shape: f32[8,128], index: 1, kind: input, shape index: {}]   ;;  %s205_s2 = inlined_call_operand.hbm [shape: f32[8,128], index: 2, kind: output, shape index: {}]  }
   0x1   :  { %8 = vsyncpa [#allocation6], 0 }
   0x2   :  { %9 = vsyncpa [#allocation4], 0  ;;  %s149_s9 = smov [#allocation2]   ;;  %s150_s11 = smov [#allocation5]  }
   0x3   :  { %s16_s10 = sshll.u32 %s149_s9, 4  ;;  %s26_s12 = sshll.u32 %s150_s11, 4  ;;  %s17_s10 = int_to_ptr.vmem [resolvable:$true] %s16_s10  ;;  %s27_s12 = int_to_ptr.vmem [resolvable:$true] %s26_s12 }
   0x4   :  { %s77_s15 = scalar_lea.hbm %s203_s0, 128 }
   0x5   :  { %p78_p0 = scmp.ne.s32.totalorder %s203_s0, %s77_s15  ;;  %p81_p1 = scmp.lt.u32.totalorder %s77_s15, %s203_s0 }
   0x7   :  { %p83_p2 = pnand %p81_p1, %p78_p0 }
   0x9   :  { %86 = shalt.err (!%p83_p2)
}
   0xa   :  { %s87_s20 = scalar_lea.vmem %s17_s10, 128  ;;  %p92_p4 = scmp.lt.s32.totalorder %s17_s10, %s17_s10 }
   0xb   :  { %p88_p3 = scmp.ne.s32.totalorder %s17_s10, %s87_s20  ;;  %p93_p5 = scmp.lt.s32.totalorder %s87_s20, %s87_s20 }
   0xd   :  { %p94_p6 = por %p93_p5, %p92_p4 }
   0xf   :  { %p95_p7 = pnand %p94_p6, %p88_p3 }
  0x11   :  { %98 = shalt.err (!%p95_p7)
}
  0x12   :  { %19 = dma.hbm_to_vmem [thread:$0]  %s203_s0, 128, %s17_s10, [#allocation3]  }
  0x13   :  { %s99_s25 = scalar_lea.hbm %s204_s1, 128 }
  0x14   :  { %p100_p8 = scmp.ne.s32.totalorder %s204_s1, %s99_s25  ;;  %p103_p9 = scmp.lt.u32.totalorder %s99_s25, %s204_s1 }
  0x16   :  { %p105_p10 = pnand %p103_p9, %p100_p8 }
  0x18   :  { %108 = shalt.err (!%p105_p10)
}
  0x19   :  { %s109_s30 = scalar_lea.vmem %s27_s12, 128  ;;  %p114_p12 = scmp.lt.s32.totalorder %s27_s12, %s27_s12 }
  0x1a   :  { %p110_p11 = scmp.ne.s32.totalorder %s27_s12, %s109_s30  ;;  %p115_p13 = scmp.lt.s32.totalorder %s109_s30, %s109_s30 }
  0x1c   :  { %p116_p0 = por %p115_p13, %p114_p12 }
  0x1e   :  { %p117_p1 = pnand %p116_p0, %p110_p11 }
  0x20   :  { %120 = shalt.err (!%p117_p1)
}
  0x21   :  { %29 = dma.hbm_to_vmem [thread:$0]  %s204_s1, 128, %s27_s12, [#allocation6]  }
  0x22   :  { %143 = dma.done.wait [#allocation3], 128  }
  0x23   :  { %144 = vsyncadd [#allocation3], 4294967168 }
  0x24   :  { %145 = dma.done.wait [#allocation6], 128  }
  0x25   :  { %146 = vsyncadd [#allocation6], 4294967168  ;;  %v44_v0 = vlaneseq  ;;  %v37_v1 = vld [vmem:[#allocation5] sm:$0xff]  ;;  %v36_v5 = vld [vmem:[#allocation2] sm:$0xff]  ;;  %s151_s4 = smov [#allocation7]  }
  0x26   :  { %v40_v2 = vand.u32 2147483647, %v37_v1  ;;  %v38_v8 = vsub.f32 %v36_v5, %v37_v1  ;;  %s62_s5 = sshll.u32 %s151_s4, 4  ;;  %s63_s5 = int_to_ptr.vmem [resolvable:$true] %s62_s5 }
  0x27   :  { %v45_v4 = vshrl.u32 %v44_v0, 7  ;;  %v47_v6 = vand.u32 127, %v44_v0  ;;  %s121_s1 = scalar_lea.vmem %s63_s5, 128  ;;  %p126_p3 = scmp.lt.s32.totalorder %s63_s5, %s63_s5 }
  0x28   :  { %v41_v3 = vadd.f32 1e-06, %v40_v2  ;;  %v39_v10 = vand.u32 2147483647, %v38_v8  ;;  %p122_p2 = scmp.ne.s32.totalorder %s63_s5, %s121_s1  ;;  %p127_p4 = scmp.lt.s32.totalorder %s121_s1, %s121_s1 }
  0x29   :  { %v51_v7 = vmul.u32 128, %v45_v4 }
  0x2a   :  { %75 = vrcp.f32 %v41_v3  ;;  %p128_p5 = por %p127_p4, %p126_p3 }
  0x2b   :  { %v52_v9 = vadd.s32 %v51_v7, %v47_v6 }
  0x2c   :  { %p129_p6 = pnand %p128_p5, %p122_p2 }
  0x2d   :  { %vm53_vm0 = vcmp.lt.s32.totalorder %v52_v9, 16 }
  0x34   :  { %v76_v11 = vpop.eup %75 }
  0x35   :  { %v43_v12 = vmul.f32 %v76_v11, %v39_v10 }
  0x37   :  { %v54_v13 = vsel %vm53_vm0, %v43_v12, 0.0 }
  0x38   :  { %55 = vst [vmem:[#allocation7] sm:$0xff] %v54_v13 }
  0x39   :  { %132 = shalt.err (!%p129_p6)
}
  0x3a   :  { %s133_s8 = scalar_lea.hbm %s205_s2, 128 }
  0x3b   :  { %p134_p7 = scmp.ne.s32.totalorder %s205_s2, %s133_s8  ;;  %p137_p8 = scmp.lt.u32.totalorder %s133_s8, %s205_s2 }
  0x3d   :  { %p139_p9 = pnand %p137_p8, %p134_p7 }
  0x3f   :  { %142 = shalt.err (!%p139_p9)
}
  0x40   :  { %65 = dma.vmem_to_hbm [thread:$0]  %s63_s5, 128, %s205_s2, [#allocation4]  }
  0x41   :  { %147 = dma.done.wait [#allocation4], 128  }
  0x42   :  { %148 = vsyncadd [#allocation4], 4294967168 }
  0x43   :  { %69 = vsyncpa [#allocation3], 1 }
  0x44   :  { %70 = vsyncpa [#allocation6], 1 }
  0x45   :  { %71 = vsyncpa [#allocation4], 1 }

</bundles_post_ra>
